<compile_context>
chip_gen: v6e
topology: v6e:2x2x1
jax: 0.10.0
libtpu: 0.0.40
codegen_flags: <defaults>
</compile_context>

<pallas_src>
import functools

import jax
import jax.numpy as jnp
from jax import lax
from jax.experimental import pallas as pl
from jax.experimental.pallas import tpu as pltpu

IGNORE_INDEX = 255
OHEM_THRESH = 0.35667494393873245   # -log(0.7), default thresh=0.7
_MAX_LANES = 256 * 1024             # hard cap on the spatial tile width


def _generation_budgets():
    """(max f32 working-block bytes, vmem_limit cap) sized per TPU generation."""
    try:
        vmem_phys = pltpu.get_tpu_info().vmem_capacity_bytes
    except Exception:                      # interpret mode / older API: assume small-VMEM chip
        vmem_phys = 64 * 1024 * 1024
    if vmem_phys <= 64 * 1024 * 1024:      # v7x: 64 MiB per TensorCore
        return 4 * 1024 * 1024, 48 * 1024 * 1024
    return 6 * 1024 * 1024, 96 * 1024 * 1024   # v5e / v6e: 128 MiB physical VMEM


def _choose_hw_tile(HW, C, max_f32_block_bytes):
    """Lane tile (multiple of 128) whose f32 (C, T) working block stays under
    budget.  HW does NOT need to be a multiple of T: the grid uses cdiv and the
    tail tile is masked inside the kernel, so tile choice is roofline-driven."""
    if HW <= 128:
        return HW                           # block == full array dim (always legal)
    budget = max(128, (max_f32_block_bytes // (4 * max(C, 1)) // 128) * 128)
    return int(min(budget, _MAX_LANES, (HW // 128) * 128))


def ohem_ce_kernel(logits_ref, tgt_ref, loss_ref, stats_ref, *, hw):
    t_idx = pl.program_id(1)

    # Native-dtype (e.g. bf16) logits block; upcast once per tile, all math in
    # f32 (v5e has no bf16 VPU/EUP).
    x = logits_ref[0].astype(jnp.float32)        # (C, T)
    tgt = tgt_ref[0]                             # (1, T) i32
    C, T = x.shape

    # Mask lanes past the end of the (possibly padded) tail tile.
    lane = lax.broadcasted_iota(jnp.int32, (1, T), 1)
    in_bounds = (t_idx * T + lane) < hw

    valid = (tgt != IGNORE_INDEX) & in_bounds    # (1, T)
    t_safe = jnp.where(valid, tgt, 0)

    # Numerically stable log-sum-exp over the class (sublane) axis.
    m = jnp.max(x, axis=0, keepdims=True)                               # (1, T)
    lse = m + jnp.log(jnp.sum(jnp.exp(x - m), axis=0, keepdims=True))   # (1, T)

    # Logit at the target class via a fused iota-compare select (no full f32
    # one-hot intermediate); per-pixel CE is lse - x[target].
    cls = lax.broadcasted_iota(jnp.int32, (C, T), 0)
    x_tgt = jnp.sum(jnp.where(cls == t_safe, x, 0.0), axis=0, keepdims=True)

    # reduction='none' + ignore_index => ignored (and padded) pixels -> 0.
    # TODO(synk): labels >= C (but != 255) silently give loss = lse here,
    # whereas PyTorch's CrossEntropyLoss would raise on malformed targets.
    loss = jnp.where(valid, lse - x_tgt, 0.0)                           # (1, T)
    loss_ref[0] = loss

    # Per-tile partial OHEM statistics, packed into one lane-dense vector.
    hard = (loss > OHEM_THRESH).astype(jnp.float32)
    sum_hard = jnp.sum(loss * hard)
    cnt_hard = jnp.sum(hard)
    cnt_valid = jnp.sum(valid.astype(jnp.float32))

    out_lane = lax.broadcasted_iota(jnp.int32, (1, 128), 1)
    stats_ref[0, 0] = (jnp.where(out_lane == 0, sum_hard, 0.0)
                       + jnp.where(out_lane == 1, cnt_hard, 0.0)
                       + jnp.where(out_lane == 2, cnt_valid, 0.0))


@functools.lru_cache(maxsize=None)
def make_ohem_call(N, C, HW, T, in_dtype_name):
    in_dtype = jnp.dtype(in_dtype_name)
    n_tiles = (HW + T - 1) // T

    # VMEM: double-buffered input/output blocks + in-kernel f32 temporaries.
    in_block = in_dtype.itemsize * C * T
    f32_block = 4 * C * T
    small_blocks = 4 * T + 4 * T + 4 * 128          # labels + loss + stats
    _, vmem_cap = _generation_budgets()
    vmem_bytes = 2 * (in_block + small_blocks) + 6 * f32_block + (4 << 20)
    vmem_bytes = int(min(vmem_cap, max(16 << 20, vmem_bytes)))

    cost = pl.CostEstimate(
        flops=int(N * HW * (6 * C + 12)),
        transcendentals=int(N * HW * (C + 1)),
        bytes_accessed=int(N * HW * (C * in_dtype.itemsize + 8)
                           + N * n_tiles * 128 * 4),
    )

    return pl.pallas_call(
        functools.partial(ohem_ce_kernel, hw=HW),
        out_shape=(
            jax.ShapeDtypeStruct((N, 1, HW), jnp.float32),            # per-pixel CE loss
            jax.ShapeDtypeStruct((N, n_tiles, 1, 128), jnp.float32),  # per-tile partial stats
        ),
        grid_spec=pltpu.PrefetchScalarGridSpec(
            num_scalar_prefetch=0,
            grid=(N, n_tiles),
            in_specs=[
                pl.BlockSpec((1, C, T), lambda b, t: (b, 0, t)),
                pl.BlockSpec((1, 1, T), lambda b, t: (b, 0, t)),
            ],
            out_specs=(
                pl.BlockSpec((1, 1, T), lambda b, t: (b, 0, t)),
                pl.BlockSpec((1, 1, 1, 128), lambda b, t: (b, t, 0, 0)),
            ),
        ),
        compiler_params=pltpu.CompilerParams(
            dimension_semantics=("parallel", "parallel"),
            vmem_limit_bytes=vmem_bytes,
        ),
        cost_estimate=cost,
    )


def ohem_ce_loss(logits, labels):
    """OHEM_CELoss.forward: logits (N, C, H, W) float (any dtype), labels (N, H, W) int."""
    N, C, H, W = logits.shape
    HW = H * W
    max_block, _ = _generation_budgets()
    T = _choose_hw_tile(HW, C, max_block)

    # Logits stay in their native dtype (bf16 halves the dominant HBM stream);
    # the kernel upcasts per tile.  Labels kept int32 for robust lowering.
    loss_map, stats = make_ohem_call(N, C, HW, T, jnp.dtype(logits.dtype).name)(
        logits.reshape(N, C, HW),
        labels.astype(jnp.int32).reshape(N, 1, HW),
    )

    total = jnp.sum(stats, axis=(0, 1, 2))       # (128,)
    sum_hard, cnt_hard, cnt_valid = total[0], total[1], total[2]

    n_min = jnp.floor(cnt_valid / 16.0)          # labels[labels != ignore].numel() // 16

    loss_flat = loss_map.reshape(-1)
    n_tot = loss_flat.shape[0]
    k_max = max(n_tot // 16, 1)                  # static bound: n_min <= n_tot // 16

    def hard_mean():
        return sum_hard / cnt_hard

    def topk_mean():
        # TODO(synk): the variable-k top-k fallback has no static-shape Pallas
        # equivalent; static-k lax.top_k + mask in plain JAX (only pays when taken).
        topv = lax.top_k(loss_flat, k_max)[0]
        idx = jnp.arange(k_max, dtype=jnp.float32)
        return jnp.sum(jnp.where(idx < n_min, topv, 0.0)) / jnp.maximum(n_min, 1.0)

    return lax.cond(cnt_hard >= n_min, hard_mean, topk_mean)


if __name__ == "__main__":
    key = jax.random.PRNGKey(0)
    k1, k2 = jax.random.split(key)
    N, C, H, W = 2, 4, 16, 16
    # Model-native bf16 logits: the kernel reads them directly (no wrapper upcast).
    logits = jax.random.normal(k1, (N, C, H, W), dtype=jnp.float32).astype(jnp.bfloat16)
    labels = jax.random.randint(k2, (N, H, W), 0, C).astype(jnp.int32)
    # a few ignored pixels (ignore_index=255), like real segmentation targets
    labels = labels.at[:, 0, 0:3].set(IGNORE_INDEX)

    loss = jax.jit(ohem_ce_loss)(logits, labels)
    jax.block_until_ready(loss)
    print("KERNEL_OK")
</pallas_src>

<mosaic_0001>
module attributes {stable_mosaic.version = 11 : i64} {
  func.func @ohem_ce_kernel(%arg0: i32, %arg1: i32, %arg2: memref<1x4x256xbf16, #tpu.memory_space<vmem>>, %arg3: memref<1x1x256xi32, #tpu.memory_space<vmem>>, %arg4: memref<1x1x256xf32, #tpu.memory_space<vmem>>, %arg5: memref<1x1x1x128xf32, #tpu.memory_space<vmem>>) attributes {dimension_semantics = [#tpu.dimension_semantics<parallel>, #tpu.dimension_semantics<parallel>], iteration_bounds = array<i64: 2, 1>, scalar_prefetch = 0 : i64, scratch_operands = 0 : i64, tpu.core_type = #tpu.core_type<tc>, window_params = [{transform_indices = @transform_0, window_bounds = array<i64: 1, 4, 256>}, {transform_indices = @transform_1, window_bounds = array<i64: 1, 1, 256>}, {transform_indices = @transform_2, window_bounds = array<i64: 1, 1, 256>}, {transform_indices = @transform_3, window_bounds = array<i64: 1, 1, 1, 128>}]} {
    %c0 = arith.constant 0 : index
    %c0_0 = arith.constant 0 : index
    %c0_1 = arith.constant 0 : index
    %0 = vector.load %arg2[%c0, %c0_0, %c0_1] : memref<1x4x256xbf16, #tpu.memory_space<vmem>>, vector<1x4x256xbf16>
    %1 = vector.shape_cast %0 : vector<1x4x256xbf16> to vector<4x256xbf16>
    %2 = arith.extf %1 : vector<4x256xbf16> to vector<4x256xf32>
    %c0_2 = arith.constant 0 : index
    %c0_3 = arith.constant 0 : index
    %c0_4 = arith.constant 0 : index
    %3 = vector.load %arg3[%c0_2, %c0_3, %c0_4] : memref<1x1x256xi32, #tpu.memory_space<vmem>>, vector<1x1x256xi32>
    %4 = vector.shape_cast %3 : vector<1x1x256xi32> to vector<1x256xi32>
    %5 = tpu.iota {dimensions = array<i32: 1>} : vector<1x256xi32>
    %c256_i32 = arith.constant 256 : i32
    %6 = arith.muli %arg1, %c256_i32 : i32
    %7 = vector.broadcast %6 : i32 to vector<1x256xi32>
    %8 = arith.addi %7, %5 : vector<1x256xi32>
    %c256_i32_5 = arith.constant 256 : i32
    %9 = vector.broadcast %c256_i32_5 : i32 to vector<1x256xi32>
    %10 = arith.cmpi slt, %8, %9 : vector<1x256xi32>
    %c255_i32 = arith.constant 255 : i32
    %11 = vector.broadcast %c255_i32 : i32 to vector<1x256xi32>
    %12 = arith.cmpi ne, %4, %11 : vector<1x256xi32>
    %13 = arith.andi %12, %10 : vector<1x256xi1>
    %c0_i32 = arith.constant 0 : i32
    %14 = vector.broadcast %c0_i32 : i32 to vector<1x256xi32>
    %15 = arith.select %13, %4, %14 : vector<1x256xi1>, vector<1x256xi32>
    %cst = arith.constant dense<0xFF800000> : vector<256xf32>
    %16 = vector.multi_reduction <maximumf>, %2, %cst [0] : vector<4x256xf32> to vector<256xf32>
    %17 = vector.shape_cast %16 : vector<256xf32> to vector<1x256xf32>
    %18 = vector.broadcast %17 : vector<1x256xf32> to vector<4x256xf32>
    %19 = arith.subf %2, %18 : vector<4x256xf32>
    %20 = math.exp %19 : vector<4x256xf32>
    %cst_6 = arith.constant dense<0.000000e+00> : vector<256xf32>
    %21 = vector.multi_reduction <add>, %20, %cst_6 [0] : vector<4x256xf32> to vector<256xf32>
    %22 = vector.shape_cast %21 : vector<256xf32> to vector<1x256xf32>
    %23 = math.log %22 : vector<1x256xf32>
    %24 = arith.addf %17, %23 : vector<1x256xf32>
    %25 = tpu.iota {dimensions = array<i32: 0>} : vector<4x256xi32>
    %26 = vector.broadcast %15 : vector<1x256xi32> to vector<4x256xi32>
    %27 = arith.cmpi eq, %25, %26 : vector<4x256xi32>
    %cst_7 = arith.constant 0.000000e+00 : f32
    %28 = vector.broadcast %cst_7 : f32 to vector<4x256xf32>
    %29 = arith.select %27, %2, %28 : vector<4x256xi1>, vector<4x256xf32>
    %cst_8 = arith.constant dense<0.000000e+00> : vector<256xf32>
    %30 = vector.multi_reduction <add>, %29, %cst_8 [0] : vector<4x256xf32> to vector<256xf32>
    %31 = vector.shape_cast %30 : vector<256xf32> to vector<1x256xf32>
    %32 = arith.subf %24, %31 : vector<1x256xf32>
    %cst_9 = arith.constant 0.000000e+00 : f32
    %33 = vector.broadcast %cst_9 : f32 to vector<1x256xf32>
    %34 = arith.select %13, %32, %33 : vector<1x256xi1>, vector<1x256xf32>
    %c0_10 = arith.constant 0 : index
    %c0_11 = arith.constant 0 : index
    %c0_12 = arith.constant 0 : index
    %35 = vector.load %arg4[%c0_10, %c0_11, %c0_12] : memref<1x1x256xf32, #tpu.memory_space<vmem>>, vector<1x1x256xf32>
    %36 = vector.shape_cast %35 : vector<1x1x256xf32> to vector<1x256xf32>
    %37 = vector.shape_cast %34 : vector<1x256xf32> to vector<1x1x256xf32>
    tpu.vector_store %arg4[%c0_10, %c0_11, %c0_12], %37 {strides = array<i32>} : memref<1x1x256xf32, #tpu.memory_space<vmem>>, vector<1x1x256xf32>,
    %cst_13 = arith.constant 0.356674939 : f32
    %38 = vector.broadcast %cst_13 : f32 to vector<1x256xf32>
    %39 = arith.cmpf ogt, %34, %38 : vector<1x256xf32>
    %40 = arith.extui %39 : vector<1x256xi1> to vector<1x256xi32>
    %41 = arith.sitofp %40 : vector<1x256xi32> to vector<1x256xf32>
    %42 = arith.mulf %34, %41 : vector<1x256xf32>
    %43 = vector.shape_cast %42 : vector<1x256xf32> to vector<1x1x256xf32>
    %cst_14 = arith.constant dense<0.000000e+00> : vector<1xf32>
    %44 = vector.multi_reduction <add>, %43, %cst_14 [1, 2] : vector<1x1x256xf32> to vector<1xf32>
    %45 = vector.shape_cast %44 : vector<1xf32> to vector<1x1x1xf32>
    %46 = vector.extract %45[0, 0, 0] : f32 from vector<1x1x1xf32>
    %47 = vector.shape_cast %41 : vector<1x256xf32> to vector<1x1x256xf32>
    %cst_15 = arith.constant dense<0.000000e+00> : vector<1xf32>
    %48 = vector.multi_reduction <add>, %47, %cst_15 [1, 2] : vector<1x1x256xf32> to vector<1xf32>
    %49 = vector.shape_cast %48 : vector<1xf32> to vector<1x1x1xf32>
    %50 = vector.extract %49[0, 0, 0] : f32 from vector<1x1x1xf32>
    %51 = arith.extui %13 : vector<1x256xi1> to vector<1x256xi32>
    %52 = arith.sitofp %51 : vector<1x256xi32> to vector<1x256xf32>
    %53 = vector.shape_cast %52 : vector<1x256xf32> to vector<1x1x256xf32>
    %cst_16 = arith.constant dense<0.000000e+00> : vector<1xf32>
    %54 = vector.multi_reduction <add>, %53, %cst_16 [1, 2] : vector<1x1x256xf32> to vector<1xf32>
    %55 = vector.shape_cast %54 : vector<1xf32> to vector<1x1x1xf32>
    %56 = vector.extract %55[0, 0, 0] : f32 from vector<1x1x1xf32>
    %57 = tpu.iota {dimensions = array<i32: 1>} : vector<1x128xi32>
    %c0_i32_17 = arith.constant 0 : i32
    %58 = vector.broadcast %c0_i32_17 : i32 to vector<1x128xi32>
    %59 = arith.cmpi eq, %57, %58 : vector<1x128xi32>
    %cst_18 = arith.constant 0.000000e+00 : f32
    %60 = vector.broadcast %46 : f32 to vector<1x128xf32>
    %61 = vector.broadcast %cst_18 : f32 to vector<1x128xf32>
    %62 = arith.select %59, %60, %61 : vector<1x128xi1>, vector<1x128xf32>
    %c1_i32 = arith.constant 1 : i32
    %63 = vector.broadcast %c1_i32 : i32 to vector<1x128xi32>
    %64 = arith.cmpi eq, %57, %63 : vector<1x128xi32>
    %cst_19 = arith.constant 0.000000e+00 : f32
    %65 = vector.broadcast %50 : f32 to vector<1x128xf32>
    %66 = vector.broadcast %cst_19 : f32 to vector<1x128xf32>
    %67 = arith.select %64, %65, %66 : vector<1x128xi1>, vector<1x128xf32>
    %68 = arith.addf %62, %67 : vector<1x128xf32>
    %c2_i32 = arith.constant 2 : i32
    %69 = vector.broadcast %c2_i32 : i32 to vector<1x128xi32>
    %70 = arith.cmpi eq, %57, %69 : vector<1x128xi32>
    %cst_20 = arith.constant 0.000000e+00 : f32
    %71 = vector.broadcast %56 : f32 to vector<1x128xf32>
    %72 = vector.broadcast %cst_20 : f32 to vector<1x128xf32>
    %73 = arith.select %70, %71, %72 : vector<1x128xi1>, vector<1x128xf32>
    %74 = arith.addf %68, %73 : vector<1x128xf32>
    %c0_21 = arith.constant 0 : index
    %c0_22 = arith.constant 0 : index
    %c0_23 = arith.constant 0 : index
    %c0_24 = arith.constant 0 : index
    %75 = vector.load %arg5[%c0_21, %c0_22, %c0_23, %c0_24] : memref<1x1x1x128xf32, #tpu.memory_space<vmem>>, vector<1x1x1x128xf32>
    %76 = vector.shape_cast %75 : vector<1x1x1x128xf32> to vector<1x128xf32>
    %77 = vector.shape_cast %74 : vector<1x128xf32> to vector<1x1x1x128xf32>
    tpu.vector_store %arg5[%c0_21, %c0_22, %c0_23, %c0_24], %77 {strides = array<i32>} : memref<1x1x1x128xf32, #tpu.memory_space<vmem>>, vector<1x1x1x128xf32>,
    return
  }
  func.func @transform_0(%arg0: i32, %arg1: i32) -> (i32, i32, i32) {
    %c0_i32 = arith.constant 0 : i32
    %c0_i32_0 = arith.constant 0 : i32
    return %arg0, %c0_i32, %arg1 : i32, i32, i32
  }
  func.func @transform_1(%arg0: i32, %arg1: i32) -> (i32, i32, i32) {
    %c0_i32 = arith.constant 0 : i32
    %c0_i32_0 = arith.constant 0 : i32
    return %arg0, %c0_i32, %arg1 : i32, i32, i32
  }
  func.func @transform_2(%arg0: i32, %arg1: i32) -> (i32, i32, i32) {
    %c0_i32 = arith.constant 0 : i32
    %c0_i32_0 = arith.constant 0 : i32
    return %arg0, %c0_i32, %arg1 : i32, i32, i32
  }
  func.func @transform_3(%arg0: i32, %arg1: i32) -> (i32, i32, i32, i32) {
    %c0_i32 = arith.constant 0 : i32
    %c0_i32_0 = arith.constant 0 : i32
    %c0_i32_1 = arith.constant 0 : i32
    return %arg0, %arg1, %c0_i32, %c0_i32_0 : i32, i32, i32, i32
  }
}

</mosaic_0001>

<bundles_post_ra>
// kernel: ohem_ce_loss.1
= control target key start
LH: loop header
LB: loop body
LE: loop exit
PB: predicated region body
PF: predicated region fallthrough
CT: control target
= control target key end

     0   :  { %s712_s12 = smov 0   ;;  %s714_s13 = smov 0   ;;  %s805_s0 = inlined_call_operand.vmem [shape: bf16[2,4,256], index: 0, kind: input, shape index: {}]   ;;  %s806_s1 = inlined_call_operand.vmem [shape: s32[2,1,256], index: 1, kind: input, shape index: {}]   ;;  %s807_s2 = inlined_call_operand.vmem [shape: f32[2,1,256], index: 2, kind: output, shape index: {0}]   ;;  %s808_s3 = inlined_call_operand.vmem [shape: f32[2,1,1,128], index: 3, kind: output, shape index: {1}]  }
   0x1   :  { %s716_s14 = smov 0  }
   0x2 LB: > { %s26_s15 = sadd.s32 1, %s683_s13  ;;  %p616_p0 = scmp.ge.s32.totalorder %s687_s14, 1  ;;  %s687_s14 = sphi %s716_s14, %s14_s14   ;;  %s683_s13 = sphi %s714_s13, %s812_s13   ;;  %s679_s12 = sphi %s712_s12, %s811_s12  }
   0x3   : > { %p28_p1 = scmp.ge.s32.totalorder %s26_s15, 2  ;;  %p179_p2 = scmp.lt.s32.totalorder %s687_s14, 3 }
   0x5   : > { %s814_s15 = smov (%p28_p1, %s26_s15), 0  ;;  %p180_p3 = pnand %p616_p0, %p179_p2 }
   0x6   : > { %p225_p4 = scmp.lt.s32.totalorder (!%p180_p3), %s679_s12, 1 }
   0x7   : > { %183 = sbr.rel (%p180_p3) target bundleno = 316 (0x13c), region = 28 }
   0xc   : > { %v261_v0 = vlaneseq  ;;  %v689_v1 = vmov 1966171168   ;;  %s816_s12 = smov (!%p225_p4, %s679_s12), 1  ;;  %v690_v4 = vmov 1   ;;  %vm294_vm0 = vcmask 1043456  }
   0xd   : > { %v275_v2 = vunpack.c.l.s4 %v689_v1  ;;  %v273_v5 = vcombine.low %v690_v4, %v690_v4  ;;  %s619_s16 = sshll.u32 %s816_s12, 1  ;;  %s625_s17 = sshll.u32 %s816_s12, 2  ;;  %vm408_vm4 = vcmask 1040384   ;;  %v691_v20 = vmov 0.0  }
   0xe   : > { %v278_v3 = vshrl.u32 %v261_v0, 7  ;;  %s241_s20 = scalar_lea.vmem %s806_s1, %s619_s16  ;;  %s232_s23 = scalar_lea.vmem %s805_s0, %s625_s17  ;;  %vm390_vm7 = vcmp.lt.s32.totalorder %v261_v0, 256 }
   0xf   : > { %v276_v6 = vunpack.c.0.s8 %v275_v2  ;;  %v260_v8 = vld [vmem:[%s241_s20] sm:$0x3]  ;;  %s250_s26 = scalar_lea.vmem %s807_s2, %s619_s16  ;;  %s257_s5 = scalar_lea.vmem %s808_s3, %s816_s12 }
  0x10   : > { %v258_v10 = vld [vmem:[%s232_s23] sm:$0xf]  ;;  %vm270_vm1 = vcmp.ne.s32.totalorder %v260_v8, 255  ;;  %v752_v17 = vsub.s32 0, %v278_v3  ;;  %v754_v18 = vsub.s32 1, %v278_v3 }
  0x11   : > { %v740_v7 = vsub.s32 %v276_v6, %v278_v3  ;;  %v259_v11 = vunpack.c.l.bf16 %v258_v10 }
  0x13   : > { %v280_v9 = vrot.slane %v273_v5, %v740_v7  ;;  %v292_v13 = vcombine.high %v259_v11, %v259_v11  ;;  %v295_v14 = vsel %vm294_vm0, %v259_v11, -inf }
  0x14   : > { %v296_v15 = vrot.slane %v295_v14, 4 }
  0x15   : > { %v287_v12 = vrot.slane %v280_v9, %v740_v7  ;;  %v302_v19 = vsel %vm294_vm0, %v292_v13, -inf }
  0x16   : > { %v297_v22 = vmax.f32 %v295_v14, %v296_v15  ;;  %v303_v23 = vrot.slane %v302_v19, 4 }
  0x17   : > { %vm288_vm2 = vcmp.ne.s32.totalorder %v287_v12, 0 }
  0x18   : > { %vm748_vm3 = vmand %vm270_vm1, %vm288_vm2  ;;  %v298_v26 = vrot.slane %v297_v22, 2  ;;  %v304_v27 = vmax.f32 %v302_v19, %v303_v23 }
  0x19   : > { %v622_v21 = vsel %vm748_vm3, 1.0, %v691_v20  ;;  %v290_v41 = vsel %vm748_vm3, %v260_v8, 0 }
  0x1a   : > { %v450_v24 = vrot.slane %v622_v21, %v752_v17  ;;  %v454_v25 = vrot.slane %v622_v21, %v754_v18  ;;  %v299_v31 = vmax.f32 %v297_v22, %v298_v26  ;;  %v305_v32 = vrot.slane %v304_v27, 2 }
  0x1b   : > { %v344_v42 = vrot.slane %v290_v41, %v752_v17  ;;  %v348_v43 = vrot.slane %v290_v41, %v754_v18 }
  0x1c   : > { %v457_v28 = vsel %vm408_vm4, %v450_v24, 0.0  ;;  %v458_v29 = vsel %vm408_vm4, %v454_v25, 0.0  ;;  %v300_v33 = vrot.slane %v299_v31, 1  ;;  %v306_v34 = vmax.f32 %v304_v27, %v305_v32 }
  0x1d   : > { %v459_v30 = vadd.f32 %v458_v29, %v457_v28  ;;  %vm349_vm5 = vcmp.eq.s32.totalorder %v278_v3, %v344_v42  ;;  %vm350_vm6 = vcmp.eq.s32.totalorder %v278_v3, %v348_v43 }
  0x1e   : > { %v301_v35 = vmax.f32 %v299_v31, %v300_v33  ;;  %v307_v36 = vrot.slane %v306_v34, 1  ;;  %v351_v48 = vsel %vm349_vm5, %v259_v11, 0.0  ;;  %v352_v52 = vsel %vm350_vm6, %v292_v13, 0.0 }
  0x1f   : > { %460 = vadd.xlane.f32.xlu1 %v459_v30  ;;  %v353_v53 = vsel %vm294_vm0, %v351_v48, 0.0  ;;  %v360_v56 = vsel %vm294_vm0, %v352_v52, 0.0 }
  0x20   : > { %v308_v37 = vmax.f32 %v306_v34, %v307_v36  ;;  %v354_v59 = vrot.slane %v353_v53, 4  ;;  %v361_v62 = vrot.slane %v360_v56, 4 }
  0x22   : > { %v311_v38 = vcombine.low %v301_v35, %v308_v37  ;;  %v355_v2 = vadd.f32 %v354_v59, %v353_v53  ;;  %v362_v4 = vadd.f32 %v361_v62, %v360_v56 }
  0x24   : > { %v313_v39 = vsub.f32 %v259_v11, %v311_v38  ;;  %v356_v5 = vrot.slane %v355_v2, 2  ;;  %v363_v6 = vrot.slane %v362_v4, 2 }
  0x26   : > { %v314_v40 = vmul.f32 1.442695, %v313_v39  ;;  %v357_v8 = vadd.f32 %v356_v5, %v355_v2  ;;  %v364_v9 = vadd.f32 %v363_v6, %v362_v4 }
  0x28   : > { %659 = vpow2.f32 %v314_v40  ;;  %v358_v10 = vrot.slane %v357_v8, 1  ;;  %v365_v11 = vrot.slane %v364_v9, 1 }
  0x2a   : > { %v359_v14 = vadd.f32 %v358_v10, %v357_v8  ;;  %v366_v22 = vadd.f32 %v365_v11, %v364_v9 }
  0x35   : > { %v660_v44 = vpop.eup %659 }
  0x36   : > { %v317_v45 = vcombine.high %v660_v44, %v660_v44  ;;  %v319_v46 = vsel %vm294_vm0, %v660_v44, 0.0 }
  0x37   : > { %v320_v47 = vrot.slane %v319_v46, 4 }
  0x38   : > { %v326_v49 = vsel %vm294_vm0, %v317_v45, 0.0 }
  0x39   : > { %v321_v50 = vadd.f32 %v320_v47, %v319_v46  ;;  %v327_v51 = vrot.slane %v326_v49, 4 }
  0x3b   : > { %v322_v54 = vrot.slane %v321_v50, 2  ;;  %v328_v55 = vadd.f32 %v327_v51, %v326_v49 }
  0x3d   : > { %v323_v57 = vadd.f32 %v322_v54, %v321_v50  ;;  %v329_v58 = vrot.slane %v328_v55, 2 }
  0x3f   : > { %v324_v60 = vrot.slane %v323_v57, 1  ;;  %v330_v61 = vadd.f32 %v329_v58, %v328_v55  ;;  %v262_v58 = vand.u32 127, %v261_v0 }
  0x41   : > { %v325_v63 = vadd.f32 %v324_v60, %v323_v57  ;;  %v331_v1 = vrot.slane %v330_v61, 1  ;;  %vm469_vm9 = vcmp.eq.s32.totalorder %v262_v58, 0  ;;  %vm472_vm10 = vcmp.eq.s32.totalorder %v262_v58, 1 }
  0x42   : > { %vm476_vm11 = vcmp.eq.s32.totalorder %v262_v58, 2 }
  0x43   : > { %v332_v3 = vadd.f32 %v331_v1, %v330_v61  ;;  %661 = vlog2.f32 %v325_v63 }
  0x45   : > { %663 = vlog2.f32 %v332_v3 }
  0x50   : > { %v662_v12 = vpop.eup %661 }
  0x51   : > { %v334_v13 = vmul.f32 0.6931472, %v662_v12 }
  0x52   : > { %v664_v15 = vpop.eup %663 }
  0x53   : > { %v336_v19 = vmul.f32 0.6931472, %v664_v15  ;;  %v337_v21 = vadd.f32 %v334_v13, %v301_v35 }
  0x55   : > { %v338_v23 = vadd.f32 %v336_v19, %v308_v37  ;;  %v367_v24 = vsub.f32 %v337_v21, %v359_v14 }
  0x57   : > { %v368_v25 = vsub.f32 %v338_v23, %v366_v22 }
  0x59   : > { %v371_v26 = vcombine.low %v367_v24, %v368_v25 }
  0x5b   : > { %v378_v27 = vrot.slane %v371_v26, %v740_v7 }
  0x5d   : > { %v385_v28 = vrot.slane %v378_v27, %v740_v7 }
  0x5f   : > { %v387_v29 = vsel %vm748_vm3, %v385_v28, 0.0 }
  0x60   : > { %392 = vst.msk [vmem:[%s250_s26] sm:$0x3] %vm390_vm7, %v387_v29  ;;  %vm393_vm8 = vcmp.gt.f32.partialorder %v387_v29, 0.35667494 }
  0x61   : > { %v621_v30 = vsel %vm393_vm8, 1.0, %v691_v20 }
  0x62   : > { %v396_v31 = vmul.f32 %v621_v30, %v387_v29  ;;  %v425_v32 = vrot.slane %v621_v30, %v752_v17  ;;  %v429_v33 = vrot.slane %v621_v30, %v754_v18 }
  0x64   : > { %v401_v34 = vrot.slane %v396_v31, %v752_v17  ;;  %v405_v35 = vrot.slane %v396_v31, %v754_v18  ;;  %v432_v16 = vsel %vm408_vm4, %v425_v32, 0.0  ;;  %v433_v37 = vsel %vm408_vm4, %v429_v33, 0.0 }
  0x65   : > { %v434_v20 = vadd.f32 %v433_v37, %v432_v16 }
  0x66   : > { %v409_v36 = vsel %vm408_vm4, %v401_v34, 0.0  ;;  %v410_v7 = vsel %vm408_vm4, %v405_v35, 0.0 }
  0x67   : > { %v411_v38 = vadd.f32 %v410_v7, %v409_v36 }
  0x69   : > { %412 = vadd.xlane.f32.xlu0 %v411_v38 }
  0x6d   : > { %435 = vadd.xlane.f32.xlu0 %v434_v20 }
  0xa8   : > { %v461_v39 = vpop.xlane.xlu1 %460 }
  0xa9   : > { %v462_v40 = vrot.slane %v461_v39, 4 }
  0xab   : > { %v463_v41 = vadd.f32 %v462_v40, %v461_v39 }
  0xad   : > { %v464_v44 = vrot.slane %v463_v41, 2 }
  0xaf   : > { %v465_v49 = vadd.f32 %v464_v44, %v463_v41 }
  0xb1   : > { %v466_v54 = vrot.slane %v465_v49, 1 }
  0xb3   : > { %v467_v57 = vadd.f32 %v466_v54, %v465_v49 }
  0xf2   : > { %v413_v42 = vpop.xlane.xlu0 %412 }
  0xf3   : > { %v414_v43 = vrot.slane %v413_v42, 4 }
  0xf5   : > { %v415_v17 = vadd.f32 %v414_v43, %v413_v42 }
  0xf6   : > { %v436_v18 = vpop.xlane.xlu0 %435 }
  0xf7   : > { %v416_v45 = vrot.slane %v415_v17, 2  ;;  %v437_v46 = vrot.slane %v436_v18, 4 }
  0xf9   : > { %v438_v47 = vadd.f32 %v437_v46, %v436_v18  ;;  %v417_v48 = vadd.f32 %v416_v45, %v415_v17 }
  0xfb   : > { %v439_v50 = vrot.slane %v438_v47, 2  ;;  %v418_v51 = vrot.slane %v417_v48, 1 }
  0xfd   : > { %v440_v52 = vadd.f32 %v439_v50, %v438_v47  ;;  %v419_v53 = vadd.f32 %v418_v51, %v417_v48 }
  0xff   : > { %626 = vpush %v419_v53  ;;  %v441_v55 = vrot.slane %v440_v52, 1 }
 0x101   : > { %v442_v56 = vadd.f32 %v441_v55, %v440_v52 }
 0x103   : > { %628 = vpush %v442_v56 }
 0x104   : > { %630 = vpush %v467_v57 }
 0x130   : > { %s627_s27 = spop %626 }
 0x131   : > { %v470_v59 = vstv %s627_s27 }
 0x132   : > { %v471_v61 = vsel %vm469_vm9, %v470_v59, 0.0 }
 0x134   : > { %s629_s28 = spop %628 }
 0x135   : > { %v473_v60 = vstv %s629_s28  ;;  %s631_s29 = spop %630 }
 0x136   : > { %v474_v62 = vsel %vm472_vm10, %v473_v60, 0.0  ;;  %v477_v63 = vstv %s631_s29 }
 0x137   : > { %v475_v1 = vadd.f32 %v474_v62, %v471_v61  ;;  %v478_v2 = vsel %vm476_vm11, %v477_v63, 0.0 }
 0x139   : > { %v479_v3 = vadd.f32 %v478_v2, %v475_v1 }
 0x13b   : > { %480 = vst [vmem:[%s257_s5] sm:$0x1] %v479_v3 }
 0x13c PF: > { %s14_s14 = sadd.s32 1, %s687_s14   ;;  %s811_s12 = smov %s683_s13 }
 0x13d   : > { %p11_p5 = scmp.ge.s32.totalorder %s14_s14, 4   ;;  %s812_s13 = smov %s814_s15 }
 0x13f   :  { %13 = sbr.rel (!%p11_p5) target bundleno = 2 (0x2), region = 73 }

</bundles_post_ra>
